<compile_context>
chip_gen: v6e
topology: v6e:2x2x1
jax: 0.10.0
libtpu: 0.0.40
codegen_flags: <defaults>
</compile_context>

<pallas_src>
import functools

import numpy as np
import jax
import jax.numpy as jnp
from jax import lax
from jax.experimental import pallas as pl
from jax.experimental.pallas import tpu as pltpu


def _tconv_kernel(x_ref, xh_ref, w_ref, o_ref, *, width, cin, cout,
                  use_sigmoid, use_mxu):
    # x_ref : (1, Cin, L)        current tile, L = rows_per_tile * W (flattened, lane axis)
    # xh_ref: (1, Cin, HALO)     halo block; first `width` lanes = first row of the next tile
    # w_ref : (4*Cout, 4*Cin)    fused parity weight (zero blocks where a tap is unused)
    # o_ref : (1, 4*Cout, L)     parity-major output planes [ee, eo, oe, oo]
    L = x_ref.shape[2]

    t = pl.program_id(1)
    nt = pl.num_programs(1)

    x00 = x_ref[0].astype(jnp.float32)                               # x[i, j]
    # Row below this tile: next tile's first row, or zeros below the image (last tile).
    keep = (t != nt - 1).astype(jnp.float32)
    halo = xh_ref[0, :, :width].astype(jnp.float32) * keep           # (Cin, W)

    # Last-image-column mask, built once at (1, L) and broadcast (review item: VALU savings).
    col = lax.broadcasted_iota(jnp.int32, (1, L), 1) % width
    last_col = col == (width - 1)

    # Spatial shifts built in-register (static lane rolls / slices, masked at boundaries).
    x01 = jnp.where(last_col, 0.0, jnp.roll(x00, -1, axis=1))        # x[i,   j+1]
    x10 = jnp.concatenate([x00[:, width:], halo], axis=1)            # x[i+1, j  ]
    x11 = jnp.where(last_col, 0.0, jnp.roll(x10, -1, axis=1))        # x[i+1, j+1]

    # ConvTranspose2d(k=3, s=2, p=1, op=1) parity decomposition (Wt = weight[kh, kw, co, ci]):
    #   out[2i,   2j  ] = Wt[1,1] x00
    #   out[2i,   2j+1] = Wt[1,2] x00 + Wt[1,0] x01
    #   out[2i+1, 2j  ] = Wt[2,1] x00 + Wt[0,1] x10
    #   out[2i+1, 2j+1] = Wt[2,2] x00 + Wt[2,0] x01 + Wt[0,2] x10 + Wt[0,0] x11
    # w_ref already holds this as a block matrix (rows = parity, cols = shift).
    if use_mxu:
        # One fused contraction per tile: (4*Cout, 4*Cin) @ (4*Cin, L), bf16 in, f32 acc.
        xs = jnp.concatenate([x00, x01, x10, x11], axis=0).astype(jnp.bfloat16)
        out = jnp.dot(w_ref[...], xs, preferred_element_type=jnp.float32)
    else:
        # Tiny channels: the MXU would be <1% utilized even fused -> VPU broadcast-FMAs on
        # full (Cout, L) vregs, touching only the 9 structurally non-zero weight blocks.
        wc = w_ref[...].astype(jnp.float32)

        def tap(p, s, xsrc):
            wb = wc[p * cout:(p + 1) * cout, s * cin:(s + 1) * cin]   # (Cout, Cin)
            acc = wb[:, 0:1] * xsrc[0:1, :]
            for ci in range(1, cin):
                acc = acc + wb[:, ci:ci + 1] * xsrc[ci:ci + 1, :]
            return acc

        o00 = tap(0, 0, x00)
        o01 = tap(1, 0, x00) + tap(1, 1, x01)
        o10 = tap(2, 0, x00) + tap(2, 2, x10)
        o11 = tap(3, 0, x00) + tap(3, 1, x01) + tap(3, 2, x10) + tap(3, 3, x11)
        out = jnp.concatenate([o00, o01, o10, o11], axis=0)          # (4*Cout, L)

    if use_sigmoid:                                                  # nn.Sigmoid(): exp + recip on the EUP
        out = pl.reciprocal(1.0 + jnp.exp(-out), approx=True)
    else:                                                            # nn.LeakyReLU(0.01)
        out = jnp.where(out >= 0, out, 0.01 * out)

    o_ref[0] = out.astype(o_ref.dtype)                               # single lane-dense store


def _pick_rows_per_tile(N, H, W, Cin, Cout, use_mxu, vmem_budget):
    """Largest row count TR such that TR | H, (TR*W) % 128 == 0 and the tile fits the budget."""
    # Bytes per flattened-spatial lane: f32 input + f32 output (double-buffered by BlockSpec)
    # plus in-kernel f32 intermediates (4 shift planes + result).
    per_lane = 4 * (2 * Cin + 2 * 4 * Cout + 4 * Cin + 4 * Cout)
    max_lanes = max(128, vmem_budget // per_lane)
    if not use_mxu:
        # Keep the VPU-path working set (shift planes + accumulators) vreg-resident.
        max_lanes = min(max_lanes, 512)
    max_lanes = min(max_lanes, 4096)
    # v7x has 2 TensorCores per chip: guarantee >= 2 grid steps when the batch axis is 1.
    max_rows = H if N > 1 else max(1, H // 2)
    best = None
    for tr in range(1, max_rows + 1):
        if H % tr != 0:
            continue
        lanes = tr * W
        if lanes > max_lanes:
            break
        if lanes % 128 == 0:
            best = tr
    return best if best is not None else H     # fall back to one full-image tile


def transpose_block_forward(x_nchw, weight, channel_output, rows_per_tile=None):
    """weight: (Cin, Cout, 3, 3), same layout as torch.nn.ConvTranspose2d (bias=False)."""
    N, Cin, H, W = x_nchw.shape
    Cout = weight.shape[1]
    assert Cout == channel_output
    HW = H * W

    # Layout constraints of this implementation.
    assert HW % 128 == 0, "H*W must be a multiple of 128"
    # TODO(synk): support W > 128 with W % 128 != 0 (needs a wider halo block).
    assert W <= 128 or W % 128 == 0

    use_sigmoid = (channel_output == 1)
    # Fused single matmul makes the MXU profitable at fairly small channel counts;
    # below this the VPU broadcast-FMA path wins (and avoids MXU fill/drain entirely).
    use_mxu = (Cin * Cout) >= 128

    # VMEM budgets parameterized by the actual chip (v5e/v6e: 128 MiB; v7x: 64 MiB per TC).
    try:
        vmem_cap = int(getattr(pltpu.get_tpu_info(), "vmem_capacity_bytes",
                               64 * 1024 * 1024))
    except Exception:
        vmem_cap = 64 * 1024 * 1024
    vmem_budget = min(vmem_cap * 3 // 8, 48 * 1024 * 1024)   # 128 MiB -> 48, 64 MiB -> 24
    vmem_limit = min(vmem_cap // 2, 64 * 1024 * 1024)        # 128 MiB -> 64, 64 MiB -> 32

    if rows_per_tile is None:
        rows_per_tile = _pick_rows_per_tile(N, H, W, Cin, Cout, use_mxu, vmem_budget)
    TR = rows_per_tile
    assert H % TR == 0
    L = TR * W
    nt = H // TR
    assert (L % 128 == 0) or nt == 1

    HALO = W if W % 128 == 0 else 128
    assert L % HALO == 0 and HW % HALO == 0
    halo_blocks_per_tile = L // HALO
    n_halo_blocks = HW // HALO

    # No transpose / pad / stacked shifts in HBM: NCHW is already (channels, flat-spatial).
    xflat = x_nchw.reshape(N, Cin, HW)

    # Fused parity weight: row blocks = output parity [ee, eo, oe, oo] (Cout each),
    # column blocks = shifted input [x00, x01, x10, x11] (Cin each).  Zero blocks are
    # exact zeros so boundary masking behaviour is preserved exactly.
    Wt = jnp.transpose(weight, (2, 3, 1, 0))          # (kh, kw, Cout, Cin)
    Z = jnp.zeros((Cout, Cin), Wt.dtype)
    wc = jnp.concatenate([
        jnp.concatenate([Wt[1, 1], Z,        Z,        Z       ], axis=1),
        jnp.concatenate([Wt[1, 2], Wt[1, 0], Z,        Z       ], axis=1),
        jnp.concatenate([Wt[2, 1], Z,        Wt[0, 1], Z       ], axis=1),
        jnp.concatenate([Wt[2, 2], Wt[2, 0], Wt[0, 2], Wt[0, 0]], axis=1),
    ], axis=0)                                        # (4*Cout, 4*Cin)
    wc = wc.astype(jnp.bfloat16 if use_mxu else jnp.float32)

    kernel = functools.partial(_tconv_kernel, width=W, cin=Cin, cout=Cout,
                               use_sigmoid=use_sigmoid, use_mxu=use_mxu)

    out = pl.pallas_call(
        kernel,
        out_shape=jax.ShapeDtypeStruct((N, 4 * Cout, HW), x_nchw.dtype),
        grid_spec=pltpu.PrefetchScalarGridSpec(
            num_scalar_prefetch=0,
            grid=(N, nt),
            in_specs=[
                # main tile: whole-row chunk of the flattened image
                pl.BlockSpec((1, Cin, L), lambda n, t: (n, 0, t)),
                # halo: first row of the next tile (wraps to block 0 on the last tile,
                # whose content is zeroed in-kernel)
                pl.BlockSpec(
                    (1, Cin, HALO),
                    lambda n, t: (n, 0,
                                  ((t + 1) * halo_blocks_per_tile) % n_halo_blocks)),
                # fused weight stays resident across the whole grid
                pl.BlockSpec((4 * Cout, 4 * Cin), lambda n, t: (0, 0)),
            ],
            out_specs=pl.BlockSpec((1, 4 * Cout, L), lambda n, t: (n, 0, t)),
        ),
        compiler_params=pltpu.CompilerParams(
            dimension_semantics=("parallel", "parallel"),
            vmem_limit_bytes=int(vmem_limit)),
    )(xflat, xflat, wc)

    # Parity interleave + NCHW in a single transpose:
    # (N, [di, dj, co], [i, j]) -> (N, co, i, di, j, dj) -> (N, Cout, 2H, 2W)
    o = out.reshape(N, 2, 2, Cout, H, W)
    o = jnp.transpose(o, (0, 3, 4, 1, 5, 2))
    return o.reshape(N, Cout, 2 * H, 2 * W)


def _reference_forward(x_nchw, weight, channel_output):
    """Pure-JAX reference: transposed conv as lhs-dilated conv with flipped kernel."""
    x = jnp.transpose(x_nchw, (0, 2, 3, 1)).astype(jnp.float32)
    w_conv = jnp.transpose(weight, (2, 3, 0, 1))[::-1, ::-1].astype(jnp.float32)  # HWIO, flipped
    y = lax.conv_general_dilated(
        x, w_conv, window_strides=(1, 1), padding=((1, 2), (1, 2)),
        lhs_dilation=(2, 2), rhs_dilation=(1, 1),
        dimension_numbers=('NHWC', 'HWIO', 'NHWC'),
        precision=lax.Precision.HIGHEST)
    if channel_output == 1:
        y = 1.0 / (1.0 + jnp.exp(-y))
    else:
        y = jnp.where(y >= 0, y, 0.01 * y)
    return jnp.transpose(y, (0, 3, 1, 2))


if __name__ == "__main__":
    key = jax.random.PRNGKey(0)
    k1, k2, k3, k4, k5 = jax.random.split(key, 5)

    # Case 1: channel_output != 1 -> ConvTranspose2d + LeakyReLU
    #         (tiny channels -> f32 VPU path; rows_per_tile=8 -> 2 spatial tiles, exercises halo)
    N, Cin, H, W = 2, 4, 16, 16
    Cout = 8
    x = jax.random.normal(k1, (N, Cin, H, W), jnp.float32)
    w1 = jax.random.normal(k2, (Cin, Cout, 3, 3), jnp.float32) * 0.1
    y1 = transpose_block_forward(x, w1, Cout, rows_per_tile=8)
    jax.block_until_ready(y1)
    np.testing.assert_allclose(np.asarray(y1),
                               np.asarray(_reference_forward(x, w1, Cout)),
                               rtol=1e-5, atol=1e-5)
    assert y1.shape == (N, Cout, 2 * H, 2 * W)

    # Case 2: channel_output == 1 -> ConvTranspose2d + Sigmoid
    #         (single full-image tile; approx-reciprocal EUP sigmoid -> looser tolerance)
    w2 = jax.random.normal(k3, (Cin, 1, 3, 3), jnp.float32) * 0.1
    y2 = transpose_block_forward(x, w2, 1)
    jax.block_until_ready(y2)
    np.testing.assert_allclose(np.asarray(y2),
                               np.asarray(_reference_forward(x, w2, 1)),
                               rtol=1e-2, atol=1e-2)
    assert y2.shape == (N, 1, 2 * H, 2 * W)

    # Case 3: larger channels -> fused single bf16 MXU matmul, batch=1
    #         (auto tiler guarantees 2 grid points so a 2-TC v7x chip stays busy)
    Cin3, Cout3 = 64, 32
    x3 = jax.random.normal(k4, (1, Cin3, H, W), jnp.float32)
    w3 = jax.random.normal(k5, (Cin3, Cout3, 3, 3), jnp.float32) * 0.05
    y3 = transpose_block_forward(x3, w3, Cout3)
    jax.block_until_ready(y3)
    np.testing.assert_allclose(np.asarray(y3),
                               np.asarray(_reference_forward(x3, w3, Cout3)),
                               rtol=5e-2, atol=5e-2)
    assert y3.shape == (1, Cout3, 2 * H, 2 * W)

    print("KERNEL_OK")
</pallas_src>

<mosaic_0001>
module attributes {stable_mosaic.version = 11 : i64} {
  func.func @_tconv_kernel(%arg0: i32, %arg1: i32, %arg2: memref<1x4x128xf32, #tpu.memory_space<vmem>>, %arg3: memref<1x4x128xf32, #tpu.memory_space<vmem>>, %arg4: memref<32x16xf32, #tpu.memory_space<vmem>>, %arg5: memref<1x32x128xf32, #tpu.memory_space<vmem>>) attributes {dimension_semantics = [#tpu.dimension_semantics<parallel>, #tpu.dimension_semantics<parallel>], iteration_bounds = array<i64: 2, 2>, scalar_prefetch = 0 : i64, scratch_operands = 0 : i64, tpu.core_type = #tpu.core_type<tc>, window_params = [{transform_indices = @transform_0, window_bounds = array<i64: 1, 4, 128>}, {transform_indices = @transform_1, window_bounds = array<i64: 1, 4, 128>}, {pipeline_mode = #tpu.pipeline_mode<synchronous>, transform_indices = @transform_2, window_bounds = array<i64: 32, 16>}, {transform_indices = @transform_3, window_bounds = array<i64: 1, 32, 128>}]} {
    %c0 = arith.constant 0 : index
    %c0_0 = arith.constant 0 : index
    %c0_1 = arith.constant 0 : index
    %0 = vector.load %arg2[%c0, %c0_0, %c0_1] : memref<1x4x128xf32, #tpu.memory_space<vmem>>, vector<1x4x128xf32>
    %1 = vector.shape_cast %0 : vector<1x4x128xf32> to vector<4x128xf32>
    %c1_i32 = arith.constant 1 : i32
    %2 = arith.cmpi ne, %arg1, %c1_i32 : i32
    %3 = arith.extui %2 : i1 to i32
    %4 = arith.sitofp %3 : i32 to f32
    %c0_2 = arith.constant 0 : index
    %c0_3 = arith.constant 0 : index
    %c0_4 = arith.constant 0 : index
    %5 = vector.load %arg3[%c0_2, %c0_3, %c0_4] : memref<1x4x128xf32, #tpu.memory_space<vmem>>, vector<1x4x16xf32>
    %6 = vector.shape_cast %5 : vector<1x4x16xf32> to vector<4x16xf32>
    %7 = vector.broadcast %4 : f32 to vector<4x16xf32>
    %8 = arith.mulf %6, %7 : vector<4x16xf32>
    %9 = tpu.iota {dimensions = array<i32: 1>} : vector<1x128xi32>
    %c16_i32 = arith.constant 16 : i32
    %c0_i32 = arith.constant 0 : i32
    %10 = arith.cmpi eq, %c16_i32, %c0_i32 : i32
    %c1_i32_5 = arith.constant 1 : i32
    %11 = arith.select %10, %c1_i32_5, %c16_i32 : i32
    %12 = vector.broadcast %11 : i32 to vector<1x128xi32>
    %13 = arith.remsi %9, %12 : vector<1x128xi32>
    %c0_i32_6 = arith.constant 0 : i32
    %14 = vector.broadcast %c0_i32_6 : i32 to vector<1x128xi32>
    %15 = arith.cmpi ne, %13, %14 : vector<1x128xi32>
    %c0_i32_7 = arith.constant 0 : i32
    %16 = vector.broadcast %c0_i32_7 : i32 to vector<1x128xi32>
    %17 = arith.cmpi slt, %13, %16 : vector<1x128xi32>
    %c0_i32_8 = arith.constant 0 : i32
    %18 = arith.cmpi slt, %11, %c0_i32_8 : i32
    %19 = vector.broadcast %18 : i1 to vector<1x128xi1>
    %20 = vector.broadcast %19 : vector<1x128xi1> to vector<1x128xi1>
    %21 = arith.xori %17, %20 : vector<1x128xi1>
    %22 = arith.andi %21, %15 : vector<1x128xi1>
    %23 = vector.broadcast %11 : i32 to vector<1x128xi32>
    %24 = arith.addi %13, %23 : vector<1x128xi32>
    %25 = arith.select %22, %24, %13 : vector<1x128xi1>, vector<1x128xi32>
    %c15_i32 = arith.constant 15 : i32
    %26 = vector.broadcast %c15_i32 : i32 to vector<1x128xi32>
    %27 = arith.cmpi eq, %25, %26 : vector<1x128xi32>
    %28 = vector.extract_strided_slice %1 {offsets = [0, 1], sizes = [4, 127], strides = [1, 1]} : vector<4x128xf32> to vector<4x127xf32>
    %29 = vector.extract_strided_slice %1 {offsets = [0, 0], sizes = [4, 1], strides = [1, 1]} : vector<4x128xf32> to vector<4x1xf32>
    %30 = tpu.concatenate %28, %29 in 1 : vector<4x127xf32>, vector<4x1xf32> -> vector<4x128xf32>
    %cst = arith.constant 0.000000e+00 : f32
    %31 = vector.shape_cast %27 : vector<1x128xi1> to vector<1x128xi1>
    %32 = vector.broadcast %31 : vector<1x128xi1> to vector<4x128xi1>
    %33 = vector.broadcast %cst : f32 to vector<4x128xf32>
    %34 = arith.select %32, %33, %30 : vector<4x128xi1>, vector<4x128xf32>
    %35 = vector.extract_strided_slice %1 {offsets = [0, 16], sizes = [4, 112], strides = [1, 1]} : vector<4x128xf32> to vector<4x112xf32>
    %36 = tpu.concatenate %35, %8 in 1 : vector<4x112xf32>, vector<4x16xf32> -> vector<4x128xf32>
    %37 = vector.extract_strided_slice %36 {offsets = [0, 1], sizes = [4, 127], strides = [1, 1]} : vector<4x128xf32> to vector<4x127xf32>
    %38 = vector.extract_strided_slice %36 {offsets = [0, 0], sizes = [4, 1], strides = [1, 1]} : vector<4x128xf32> to vector<4x1xf32>
    %39 = tpu.concatenate %37, %38 in 1 : vector<4x127xf32>, vector<4x1xf32> -> vector<4x128xf32>
    %cst_9 = arith.constant 0.000000e+00 : f32
    %40 = vector.shape_cast %27 : vector<1x128xi1> to vector<1x128xi1>
    %41 = vector.broadcast %40 : vector<1x128xi1> to vector<4x128xi1>
    %42 = vector.broadcast %cst_9 : f32 to vector<4x128xf32>
    %43 = arith.select %41, %42, %39 : vector<4x128xi1>, vector<4x128xf32>
    %c0_10 = arith.constant 0 : index
    %c0_11 = arith.constant 0 : index
    %44 = vector.load %arg4[%c0_10, %c0_11] : memref<32x16xf32, #tpu.memory_space<vmem>>, vector<32x16xf32>
    %45 = vector.extract_strided_slice %44 {offsets = [0, 0], sizes = [8, 4], strides = [1, 1]} : vector<32x16xf32> to vector<8x4xf32>
    %46 = vector.extract_strided_slice %45 {offsets = [0, 0], sizes = [8, 1], strides = [1, 1]} : vector<8x4xf32> to vector<8x1xf32>
    %47 = vector.extract_strided_slice %1 {offsets = [0, 0], sizes = [1, 128], strides = [1, 1]} : vector<4x128xf32> to vector<1x128xf32>
    %48 = vector.broadcast %46 : vector<8x1xf32> to vector<8x128xf32>
    %49 = vector.broadcast %47 : vector<1x128xf32> to vector<8x128xf32>
    %50 = arith.mulf %48, %49 : vector<8x128xf32>
    %51 = vector.extract_strided_slice %45 {offsets = [0, 1], sizes = [8, 1], strides = [1, 1]} : vector<8x4xf32> to vector<8x1xf32>
    %52 = vector.extract_strided_slice %1 {offsets = [1, 0], sizes = [1, 128], strides = [1, 1]} : vector<4x128xf32> to vector<1x128xf32>
    %53 = vector.broadcast %51 : vector<8x1xf32> to vector<8x128xf32>
    %54 = vector.broadcast %52 : vector<1x128xf32> to vector<8x128xf32>
    %55 = arith.mulf %53, %54 : vector<8x128xf32>
    %56 = arith.addf %50, %55 : vector<8x128xf32>
    %57 = vector.extract_strided_slice %45 {offsets = [0, 2], sizes = [8, 1], strides = [1, 1]} : vector<8x4xf32> to vector<8x1xf32>
    %58 = vector.extract_strided_slice %1 {offsets = [2, 0], sizes = [1, 128], strides = [1, 1]} : vector<4x128xf32> to vector<1x128xf32>
    %59 = vector.broadcast %57 : vector<8x1xf32> to vector<8x128xf32>
    %60 = vector.broadcast %58 : vector<1x128xf32> to vector<8x128xf32>
    %61 = arith.mulf %59, %60 : vector<8x128xf32>
    %62 = arith.addf %56, %61 : vector<8x128xf32>
    %63 = vector.extract_strided_slice %45 {offsets = [0, 3], sizes = [8, 1], strides = [1, 1]} : vector<8x4xf32> to vector<8x1xf32>
    %64 = vector.extract_strided_slice %1 {offsets = [3, 0], sizes = [1, 128], strides = [1, 1]} : vector<4x128xf32> to vector<1x128xf32>
    %65 = vector.broadcast %63 : vector<8x1xf32> to vector<8x128xf32>
    %66 = vector.broadcast %64 : vector<1x128xf32> to vector<8x128xf32>
    %67 = arith.mulf %65, %66 : vector<8x128xf32>
    %68 = arith.addf %62, %67 : vector<8x128xf32>
    %69 = vector.extract_strided_slice %44 {offsets = [8, 0], sizes = [8, 4], strides = [1, 1]} : vector<32x16xf32> to vector<8x4xf32>
    %70 = vector.extract_strided_slice %69 {offsets = [0, 0], sizes = [8, 1], strides = [1, 1]} : vector<8x4xf32> to vector<8x1xf32>
    %71 = vector.extract_strided_slice %1 {offsets = [0, 0], sizes = [1, 128], strides = [1, 1]} : vector<4x128xf32> to vector<1x128xf32>
    %72 = vector.broadcast %70 : vector<8x1xf32> to vector<8x128xf32>
    %73 = vector.broadcast %71 : vector<1x128xf32> to vector<8x128xf32>
    %74 = arith.mulf %72, %73 : vector<8x128xf32>
    %75 = vector.extract_strided_slice %69 {offsets = [0, 1], sizes = [8, 1], strides = [1, 1]} : vector<8x4xf32> to vector<8x1xf32>
    %76 = vector.extract_strided_slice %1 {offsets = [1, 0], sizes = [1, 128], strides = [1, 1]} : vector<4x128xf32> to vector<1x128xf32>
    %77 = vector.broadcast %75 : vector<8x1xf32> to vector<8x128xf32>
    %78 = vector.broadcast %76 : vector<1x128xf32> to vector<8x128xf32>
    %79 = arith.mulf %77, %78 : vector<8x128xf32>
    %80 = arith.addf %74, %79 : vector<8x128xf32>
    %81 = vector.extract_strided_slice %69 {offsets = [0, 2], sizes = [8, 1], strides = [1, 1]} : vector<8x4xf32> to vector<8x1xf32>
    %82 = vector.extract_strided_slice %1 {offsets = [2, 0], sizes = [1, 128], strides = [1, 1]} : vector<4x128xf32> to vector<1x128xf32>
    %83 = vector.broadcast %81 : vector<8x1xf32> to vector<8x128xf32>
    %84 = vector.broadcast %82 : vector<1x128xf32> to vector<8x128xf32>
    %85 = arith.mulf %83, %84 : vector<8x128xf32>
    %86 = arith.addf %80, %85 : vector<8x128xf32>
    %87 = vector.extract_strided_slice %69 {offsets = [0, 3], sizes = [8, 1], strides = [1, 1]} : vector<8x4xf32> to vector<8x1xf32>
    %88 = vector.extract_strided_slice %1 {offsets = [3, 0], sizes = [1, 128], strides = [1, 1]} : vector<4x128xf32> to vector<1x128xf32>
    %89 = vector.broadcast %87 : vector<8x1xf32> to vector<8x128xf32>
    %90 = vector.broadcast %88 : vector<1x128xf32> to vector<8x128xf32>
    %91 = arith.mulf %89, %90 : vector<8x128xf32>
    %92 = arith.addf %86, %91 : vector<8x128xf32>
    %93 = vector.extract_strided_slice %44 {offsets = [8, 4], sizes = [8, 4], strides = [1, 1]} : vector<32x16xf32> to vector<8x4xf32>
    %94 = vector.extract_strided_slice %93 {offsets = [0, 0], sizes = [8, 1], strides = [1, 1]} : vector<8x4xf32> to vector<8x1xf32>
    %95 = vector.extract_strided_slice %34 {offsets = [0, 0], sizes = [1, 128], strides = [1, 1]} : vector<4x128xf32> to vector<1x128xf32>
    %96 = vector.broadcast %94 : vector<8x1xf32> to vector<8x128xf32>
    %97 = vector.broadcast %95 : vector<1x128xf32> to vector<8x128xf32>
    %98 = arith.mulf %96, %97 : vector<8x128xf32>
    %99 = vector.extract_strided_slice %93 {offsets = [0, 1], sizes = [8, 1], strides = [1, 1]} : vector<8x4xf32> to vector<8x1xf32>
    %100 = vector.extract_strided_slice %34 {offsets = [1, 0], sizes = [1, 128], strides = [1, 1]} : vector<4x128xf32> to vector<1x128xf32>
    %101 = vector.broadcast %99 : vector<8x1xf32> to vector<8x128xf32>
    %102 = vector.broadcast %100 : vector<1x128xf32> to vector<8x128xf32>
    %103 = arith.mulf %101, %102 : vector<8x128xf32>
    %104 = arith.addf %98, %103 : vector<8x128xf32>
    %105 = vector.extract_strided_slice %93 {offsets = [0, 2], sizes = [8, 1], strides = [1, 1]} : vector<8x4xf32> to vector<8x1xf32>
    %106 = vector.extract_strided_slice %34 {offsets = [2, 0], sizes = [1, 128], strides = [1, 1]} : vector<4x128xf32> to vector<1x128xf32>
    %107 = vector.broadcast %105 : vector<8x1xf32> to vector<8x128xf32>
    %108 = vector.broadcast %106 : vector<1x128xf32> to vector<8x128xf32>
    %109 = arith.mulf %107, %108 : vector<8x128xf32>
    %110 = arith.addf %104, %109 : vector<8x128xf32>
    %111 = vector.extract_strided_slice %93 {offsets = [0, 3], sizes = [8, 1], strides = [1, 1]} : vector<8x4xf32> to vector<8x1xf32>
    %112 = vector.extract_strided_slice %34 {offsets = [3, 0], sizes = [1, 128], strides = [1, 1]} : vector<4x128xf32> to vector<1x128xf32>
    %113 = vector.broadcast %111 : vector<8x1xf32> to vector<8x128xf32>
    %114 = vector.broadcast %112 : vector<1x128xf32> to vector<8x128xf32>
    %115 = arith.mulf %113, %114 : vector<8x128xf32>
    %116 = arith.addf %110, %115 : vector<8x128xf32>
    %117 = arith.addf %92, %116 : vector<8x128xf32>
    %118 = vector.extract_strided_slice %44 {offsets = [16, 0], sizes = [8, 4], strides = [1, 1]} : vector<32x16xf32> to vector<8x4xf32>
    %119 = vector.extract_strided_slice %118 {offsets = [0, 0], sizes = [8, 1], strides = [1, 1]} : vector<8x4xf32> to vector<8x1xf32>
    %120 = vector.extract_strided_slice %1 {offsets = [0, 0], sizes = [1, 128], strides = [1, 1]} : vector<4x128xf32> to vector<1x128xf32>
    %121 = vector.broadcast %119 : vector<8x1xf32> to vector<8x128xf32>
    %122 = vector.broadcast %120 : vector<1x128xf32> to vector<8x128xf32>
    %123 = arith.mulf %121, %122 : vector<8x128xf32>
    %124 = vector.extract_strided_slice %118 {offsets = [0, 1], sizes = [8, 1], strides = [1, 1]} : vector<8x4xf32> to vector<8x1xf32>
    %125 = vector.extract_strided_slice %1 {offsets = [1, 0], sizes = [1, 128], strides = [1, 1]} : vector<4x128xf32> to vector<1x128xf32>
    %126 = vector.broadcast %124 : vector<8x1xf32> to vector<8x128xf32>
    %127 = vector.broadcast %125 : vector<1x128xf32> to vector<8x128xf32>
    %128 = arith.mulf %126, %127 : vector<8x128xf32>
    %129 = arith.addf %123, %128 : vector<8x128xf32>
    %130 = vector.extract_strided_slice %118 {offsets = [0, 2], sizes = [8, 1], strides = [1, 1]} : vector<8x4xf32> to vector<8x1xf32>
    %131 = vector.extract_strided_slice %1 {offsets = [2, 0], sizes = [1, 128], strides = [1, 1]} : vector<4x128xf32> to vector<1x128xf32>
    %132 = vector.broadcast %130 : vector<8x1xf32> to vector<8x128xf32>
    %133 = vector.broadcast %131 : vector<1x128xf32> to vector<8x128xf32>
    %134 = arith.mulf %132, %133 : vector<8x128xf32>
    %135 = arith.addf %129, %134 : vector<8x128xf32>
    %136 = vector.extract_strided_slice %118 {offsets = [0, 3], sizes = [8, 1], strides = [1, 1]} : vector<8x4xf32> to vector<8x1xf32>
    %137 = vector.extract_strided_slice %1 {offsets = [3, 0], sizes = [1, 128], strides = [1, 1]} : vector<4x128xf32> to vector<1x128xf32>
    %138 = vector.broadcast %136 : vector<8x1xf32> to vector<8x128xf32>
    %139 = vector.broadcast %137 : vector<1x128xf32> to vector<8x128xf32>
    %140 = arith.mulf %138, %139 : vector<8x128xf32>
    %141 = arith.addf %135, %140 : vector<8x128xf32>
    %142 = vector.extract_strided_slice %44 {offsets = [16, 8], sizes = [8, 4], strides = [1, 1]} : vector<32x16xf32> to vector<8x4xf32>
    %143 = vector.extract_strided_slice %142 {offsets = [0, 0], sizes = [8, 1], strides = [1, 1]} : vector<8x4xf32> to vector<8x1xf32>
    %144 = vector.extract_strided_slice %36 {offsets = [0, 0], sizes = [1, 128], strides = [1, 1]} : vector<4x128xf32> to vector<1x128xf32>
    %145 = vector.broadcast %143 : vector<8x1xf32> to vector<8x128xf32>
    %146 = vector.broadcast %144 : vector<1x128xf32> to vector<8x128xf32>
    %147 = arith.mulf %145, %146 : vector<8x128xf32>
    %148 = vector.extract_strided_slice %142 {offsets = [0, 1], sizes = [8, 1], strides = [1, 1]} : vector<8x4xf32> to vector<8x1xf32>
    %149 = vector.extract_strided_slice %36 {offsets = [1, 0], sizes = [1, 128], strides = [1, 1]} : vector<4x128xf32> to vector<1x128xf32>
    %150 = vector.broadcast %148 : vector<8x1xf32> to vector<8x128xf32>
    %151 = vector.broadcast %149 : vector<1x128xf32> to vector<8x128xf32>
    %152 = arith.mulf %150, %151 : vector<8x128xf32>
    %153 = arith.addf %147, %152 : vector<8x128xf32>
    %154 = vector.extract_strided_slice %142 {offsets = [0, 2], sizes = [8, 1], strides = [1, 1]} : vector<8x4xf32> to vector<8x1xf32>
    %155 = vector.extract_strided_slice %36 {offsets = [2, 0], sizes = [1, 128], strides = [1, 1]} : vector<4x128xf32> to vector<1x128xf32>
    %156 = vector.broadcast %154 : vector<8x1xf32> to vector<8x128xf32>
    %157 = vector.broadcast %155 : vector<1x128xf32> to vector<8x128xf32>
    %158 = arith.mulf %156, %157 : vector<8x128xf32>
    %159 = arith.addf %153, %158 : vector<8x128xf32>
    %160 = vector.extract_strided_slice %142 {offsets = [0, 3], sizes = [8, 1], strides = [1, 1]} : vector<8x4xf32> to vector<8x1xf32>
    %161 = vector.extract_strided_slice %36 {offsets = [3, 0], sizes = [1, 128], strides = [1, 1]} : vector<4x128xf32> to vector<1x128xf32>
    %162 = vector.broadcast %160 : vector<8x1xf32> to vector<8x128xf32>
    %163 = vector.broadcast %161 : vector<1x128xf32> to vector<8x128xf32>
    %164 = arith.mulf %162, %163 : vector<8x128xf32>
    %165 = arith.addf %159, %164 : vector<8x128xf32>
    %166 = arith.addf %141, %165 : vector<8x128xf32>
    %167 = vector.extract_strided_slice %44 {offsets = [24, 0], sizes = [8, 4], strides = [1, 1]} : vector<32x16xf32> to vector<8x4xf32>
    %168 = vector.extract_strided_slice %167 {offsets = [0, 0], sizes = [8, 1], strides = [1, 1]} : vector<8x4xf32> to vector<8x1xf32>
    %169 = vector.extract_strided_slice %1 {offsets = [0, 0], sizes = [1, 128], strides = [1, 1]} : vector<4x128xf32> to vector<1x128xf32>
    %170 = vector.broadcast %168 : vector<8x1xf32> to vector<8x128xf32>
    %171 = vector.broadcast %169 : vector<1x128xf32> to vector<8x128xf32>
    %172 = arith.mulf %170, %171 : vector<8x128xf32>
    %173 = vector.extract_strided_slice %167 {offsets = [0, 1], sizes = [8, 1], strides = [1, 1]} : vector<8x4xf32> to vector<8x1xf32>
    %174 = vector.extract_strided_slice %1 {offsets = [1, 0], sizes = [1, 128], strides = [1, 1]} : vector<4x128xf32> to vector<1x128xf32>
    %175 = vector.broadcast %173 : vector<8x1xf32> to vector<8x128xf32>
    %176 = vector.broadcast %174 : vector<1x128xf32> to vector<8x128xf32>
    %177 = arith.mulf %175, %176 : vector<8x128xf32>
    %178 = arith.addf %172, %177 : vector<8x128xf32>
    %179 = vector.extract_strided_slice %167 {offsets = [0, 2], sizes = [8, 1], strides = [1, 1]} : vector<8x4xf32> to vector<8x1xf32>
    %180 = vector.extract_strided_slice %1 {offsets = [2, 0], sizes = [1, 128], strides = [1, 1]} : vector<4x128xf32> to vector<1x128xf32>
    %181 = vector.broadcast %179 : vector<8x1xf32> to vector<8x128xf32>
    %182 = vector.broadcast %180 : vector<1x128xf32> to vector<8x128xf32>
    %183 = arith.mulf %181, %182 : vector<8x128xf32>
    %184 = arith.addf %178, %183 : vector<8x128xf32>
    %185 = vector.extract_strided_slice %167 {offsets = [0, 3], sizes = [8, 1], strides = [1, 1]} : vector<8x4xf32> to vector<8x1xf32>
    %186 = vector.extract_strided_slice %1 {offsets = [3, 0], sizes = [1, 128], strides = [1, 1]} : vector<4x128xf32> to vector<1x128xf32>
    %187 = vector.broadcast %185 : vector<8x1xf32> to vector<8x128xf32>
    %188 = vector.broadcast %186 : vector<1x128xf32> to vector<8x128xf32>
    %189 = arith.mulf %187, %188 : vector<8x128xf32>
    %190 = arith.addf %184, %189 : vector<8x128xf32>
    %191 = vector.extract_strided_slice %44 {offsets = [24, 4], sizes = [8, 4], strides = [1, 1]} : vector<32x16xf32> to vector<8x4xf32>
    %192 = vector.extract_strided_slice %191 {offsets = [0, 0], sizes = [8, 1], strides = [1, 1]} : vector<8x4xf32> to vector<8x1xf32>
    %193 = vector.extract_strided_slice %34 {offsets = [0, 0], sizes = [1, 128], strides = [1, 1]} : vector<4x128xf32> to vector<1x128xf32>
    %194 = vector.broadcast %192 : vector<8x1xf32> to vector<8x128xf32>
    %195 = vector.broadcast %193 : vector<1x128xf32> to vector<8x128xf32>
    %196 = arith.mulf %194, %195 : vector<8x128xf32>
    %197 = vector.extract_strided_slice %191 {offsets = [0, 1], sizes = [8, 1], strides = [1, 1]} : vector<8x4xf32> to vector<8x1xf32>
    %198 = vector.extract_strided_slice %34 {offsets = [1, 0], sizes = [1, 128], strides = [1, 1]} : vector<4x128xf32> to vector<1x128xf32>
    %199 = vector.broadcast %197 : vector<8x1xf32> to vector<8x128xf32>
    %200 = vector.broadcast %198 : vector<1x128xf32> to vector<8x128xf32>
    %201 = arith.mulf %199, %200 : vector<8x128xf32>
    %202 = arith.addf %196, %201 : vector<8x128xf32>
    %203 = vector.extract_strided_slice %191 {offsets = [0, 2], sizes = [8, 1], strides = [1, 1]} : vector<8x4xf32> to vector<8x1xf32>
    %204 = vector.extract_strided_slice %34 {offsets = [2, 0], sizes = [1, 128], strides = [1, 1]} : vector<4x128xf32> to vector<1x128xf32>
    %205 = vector.broadcast %203 : vector<8x1xf32> to vector<8x128xf32>
    %206 = vector.broadcast %204 : vector<1x128xf32> to vector<8x128xf32>
    %207 = arith.mulf %205, %206 : vector<8x128xf32>
    %208 = arith.addf %202, %207 : vector<8x128xf32>
    %209 = vector.extract_strided_slice %191 {offsets = [0, 3], sizes = [8, 1], strides = [1, 1]} : vector<8x4xf32> to vector<8x1xf32>
    %210 = vector.extract_strided_slice %34 {offsets = [3, 0], sizes = [1, 128], strides = [1, 1]} : vector<4x128xf32> to vector<1x128xf32>
    %211 = vector.broadcast %209 : vector<8x1xf32> to vector<8x128xf32>
    %212 = vector.broadcast %210 : vector<1x128xf32> to vector<8x128xf32>
    %213 = arith.mulf %211, %212 : vector<8x128xf32>
    %214 = arith.addf %208, %213 : vector<8x128xf32>
    %215 = arith.addf %190, %214 : vector<8x128xf32>
    %216 = vector.extract_strided_slice %44 {offsets = [24, 8], sizes = [8, 4], strides = [1, 1]} : vector<32x16xf32> to vector<8x4xf32>
    %217 = vector.extract_strided_slice %216 {offsets = [0, 0], sizes = [8, 1], strides = [1, 1]} : vector<8x4xf32> to vector<8x1xf32>
    %218 = vector.extract_strided_slice %36 {offsets = [0, 0], sizes = [1, 128], strides = [1, 1]} : vector<4x128xf32> to vector<1x128xf32>
    %219 = vector.broadcast %217 : vector<8x1xf32> to vector<8x128xf32>
    %220 = vector.broadcast %218 : vector<1x128xf32> to vector<8x128xf32>
    %221 = arith.mulf %219, %220 : vector<8x128xf32>
    %222 = vector.extract_strided_slice %216 {offsets = [0, 1], sizes = [8, 1], strides = [1, 1]} : vector<8x4xf32> to vector<8x1xf32>
    %223 = vector.extract_strided_slice %36 {offsets = [1, 0], sizes = [1, 128], strides = [1, 1]} : vector<4x128xf32> to vector<1x128xf32>
    %224 = vector.broadcast %222 : vector<8x1xf32> to vector<8x128xf32>
    %225 = vector.broadcast %223 : vector<1x128xf32> to vector<8x128xf32>
    %226 = arith.mulf %224, %225 : vector<8x128xf32>
    %227 = arith.addf %221, %226 : vector<8x128xf32>
    %228 = vector.extract_strided_slice %216 {offsets = [0, 2], sizes = [8, 1], strides = [1, 1]} : vector<8x4xf32> to vector<8x1xf32>
    %229 = vector.extract_strided_slice %36 {offsets = [2, 0], sizes = [1, 128], strides = [1, 1]} : vector<4x128xf32> to vector<1x128xf32>
    %230 = vector.broadcast %228 : vector<8x1xf32> to vector<8x128xf32>
    %231 = vector.broadcast %229 : vector<1x128xf32> to vector<8x128xf32>
    %232 = arith.mulf %230, %231 : vector<8x128xf32>
    %233 = arith.addf %227, %232 : vector<8x128xf32>
    %234 = vector.extract_strided_slice %216 {offsets = [0, 3], sizes = [8, 1], strides = [1, 1]} : vector<8x4xf32> to vector<8x1xf32>
    %235 = vector.extract_strided_slice %36 {offsets = [3, 0], sizes = [1, 128], strides = [1, 1]} : vector<4x128xf32> to vector<1x128xf32>
    %236 = vector.broadcast %234 : vector<8x1xf32> to vector<8x128xf32>
    %237 = vector.broadcast %235 : vector<1x128xf32> to vector<8x128xf32>
    %238 = arith.mulf %236, %237 : vector<8x128xf32>
    %239 = arith.addf %233, %238 : vector<8x128xf32>
    %240 = arith.addf %215, %239 : vector<8x128xf32>
    %241 = vector.extract_strided_slice %44 {offsets = [24, 12], sizes = [8, 4], strides = [1, 1]} : vector<32x16xf32> to vector<8x4xf32>
    %242 = vector.extract_strided_slice %241 {offsets = [0, 0], sizes = [8, 1], strides = [1, 1]} : vector<8x4xf32> to vector<8x1xf32>
    %243 = vector.extract_strided_slice %43 {offsets = [0, 0], sizes = [1, 128], strides = [1, 1]} : vector<4x128xf32> to vector<1x128xf32>
    %244 = vector.broadcast %242 : vector<8x1xf32> to vector<8x128xf32>
    %245 = vector.broadcast %243 : vector<1x128xf32> to vector<8x128xf32>
    %246 = arith.mulf %244, %245 : vector<8x128xf32>
    %247 = vector.extract_strided_slice %241 {offsets = [0, 1], sizes = [8, 1], strides = [1, 1]} : vector<8x4xf32> to vector<8x1xf32>
    %248 = vector.extract_strided_slice %43 {offsets = [1, 0], sizes = [1, 128], strides = [1, 1]} : vector<4x128xf32> to vector<1x128xf32>
    %249 = vector.broadcast %247 : vector<8x1xf32> to vector<8x128xf32>
    %250 = vector.broadcast %248 : vector<1x128xf32> to vector<8x128xf32>
    %251 = arith.mulf %249, %250 : vector<8x128xf32>
    %252 = arith.addf %246, %251 : vector<8x128xf32>
    %253 = vector.extract_strided_slice %241 {offsets = [0, 2], sizes = [8, 1], strides = [1, 1]} : vector<8x4xf32> to vector<8x1xf32>
    %254 = vector.extract_strided_slice %43 {offsets = [2, 0], sizes = [1, 128], strides = [1, 1]} : vector<4x128xf32> to vector<1x128xf32>
    %255 = vector.broadcast %253 : vector<8x1xf32> to vector<8x128xf32>
    %256 = vector.broadcast %254 : vector<1x128xf32> to vector<8x128xf32>
    %257 = arith.mulf %255, %256 : vector<8x128xf32>
    %258 = arith.addf %252, %257 : vector<8x128xf32>
    %259 = vector.extract_strided_slice %241 {offsets = [0, 3], sizes = [8, 1], strides = [1, 1]} : vector<8x4xf32> to vector<8x1xf32>
    %260 = vector.extract_strided_slice %43 {offsets = [3, 0], sizes = [1, 128], strides = [1, 1]} : vector<4x128xf32> to vector<1x128xf32>
    %261 = vector.broadcast %259 : vector<8x1xf32> to vector<8x128xf32>
    %262 = vector.broadcast %260 : vector<1x128xf32> to vector<8x128xf32>
    %263 = arith.mulf %261, %262 : vector<8x128xf32>
    %264 = arith.addf %258, %263 : vector<8x128xf32>
    %265 = arith.addf %240, %264 : vector<8x128xf32>
    %266 = tpu.concatenate %68, %117, %166, %265 in 0 : vector<8x128xf32>, vector<8x128xf32>, vector<8x128xf32>, vector<8x128xf32> -> vector<32x128xf32>
    %cst_12 = arith.constant 0.000000e+00 : f32
    %267 = vector.broadcast %cst_12 : f32 to vector<32x128xf32>
    %268 = arith.cmpf oge, %266, %267 : vector<32x128xf32>
    %cst_13 = arith.constant 0.00999999977 : f32
    %269 = vector.broadcast %cst_13 : f32 to vector<32x128xf32>
    %270 = arith.mulf %269, %266 : vector<32x128xf32>
    %271 = arith.select %268, %266, %270 : vector<32x128xi1>, vector<32x128xf32>
    %c0_14 = arith.constant 0 : index
    %c0_15 = arith.constant 0 : index
    %c0_16 = arith.constant 0 : index
    %272 = vector.load %arg5[%c0_14, %c0_15, %c0_16] : memref<1x32x128xf32, #tpu.memory_space<vmem>>, vector<1x32x128xf32>
    %273 = vector.shape_cast %272 : vector<1x32x128xf32> to vector<32x128xf32>
    %274 = vector.shape_cast %271 : vector<32x128xf32> to vector<1x32x128xf32>
    tpu.vector_store %arg5[%c0_14, %c0_15, %c0_16], %274 {strides = array<i32>} : memref<1x32x128xf32, #tpu.memory_space<vmem>>, vector<1x32x128xf32>,
    return
  }
  func.func @transform_0(%arg0: i32, %arg1: i32) -> (i32, i32, i32) {
    %c0_i32 = arith.constant 0 : i32
    %c0_i32_0 = arith.constant 0 : i32
    return %arg0, %c0_i32, %arg1 : i32, i32, i32
  }
  func.func @transform_1(%arg0: i32, %arg1: i32) -> (i32, i32, i32) {
    %c1_i32 = arith.constant 1 : i32
    %0 = arith.addi %arg1, %c1_i32 : i32
    %c1_i32_0 = arith.constant 1 : i32
    %1 = arith.muli %0, %c1_i32_0 : i32
    %c2_i32 = arith.constant 2 : i32
    %c0_i32 = arith.constant 0 : i32
    %2 = arith.cmpi eq, %c2_i32, %c0_i32 : i32
    %c1_i32_1 = arith.constant 1 : i32
    %3 = arith.select %2, %c1_i32_1, %c2_i32 : i32
    %4 = arith.remsi %1, %3 : i32
    %c0_i32_2 = arith.constant 0 : i32
    %5 = arith.cmpi ne, %4, %c0_i32_2 : i32
    %c0_i32_3 = arith.constant 0 : i32
    %6 = arith.cmpi slt, %4, %c0_i32_3 : i32
    %c0_i32_4 = arith.constant 0 : i32
    %7 = arith.cmpi slt, %3, %c0_i32_4 : i32
    %8 = arith.xori %6, %7 : i1
    %9 = arith.andi %8, %5 : i1
    %10 = arith.addi %4, %3 : i32
    %11 = arith.select %9, %10, %4 : i32
    %c0_i32_5 = arith.constant 0 : i32
    %c0_i32_6 = arith.constant 0 : i32
    return %arg0, %c0_i32_5, %11 : i32, i32, i32
  }
  func.func @transform_2(%arg0: i32, %arg1: i32) -> (i32, i32) {
    %c0_i32 = arith.constant 0 : i32
    %c0_i32_0 = arith.constant 0 : i32
    %c0_i32_1 = arith.constant 0 : i32
    return %c0_i32, %c0_i32_0 : i32, i32
  }
  func.func @transform_3(%arg0: i32, %arg1: i32) -> (i32, i32, i32) {
    %c0_i32 = arith.constant 0 : i32
    %c0_i32_0 = arith.constant 0 : i32
    return %arg0, %c0_i32, %arg1 : i32, i32, i32
  }
}

</mosaic_0001>

<bundles_post_ra>
// kernel: tpu_custom_call.1
= control target key start
LH: loop header
LB: loop body
LE: loop exit
PB: predicated region body
PF: predicated region fallthrough
CT: control target
= control target key end

     0   :  { %8 = vsyncpa [#allocation3], 0  ;;  %s1335_s0 = inlined_call_operand.vmem [shape: f32[2,4,256], index: 0, kind: input, shape index: {}]   ;;  %s1336_s1 = inlined_call_operand.vmem [shape: f32[2,4,256], index: 1, kind: input, shape index: {}]   ;;  %s1337_s2 = inlined_call_operand.vmem [shape: f32[32,16], index: 2, kind: input, shape index: {}]   ;;  %s1338_s3 = inlined_call_operand.hbm [shape: f32[2,32,256], index: 3, kind: output, shape index: {}]  }
   0x1   :  { %10 = vsyncpa [#allocation3 + $0x1], 0  ;;  %s1058_s12 = smov 0   ;;  %s1060_s13 = smov 0  }
   0x2   :  { %s1062_s14 = smov 0   ;;  %s1064_s15 = smov 0  }
   0x3   :  { %s1066_s16 = smov 0   ;;  %s1068_s17 = smov 0  }
   0x4   :  { %s1070_s18 = smov 0   ;;  %s1072_s19 = smov 0  }
   0x5 LB: > { %s773_s20 = sadd.s32 4294967295, %s1014_s19   ;;  %s774_s21 = sadd.s32 4294967294, %s1014_s19   ;;  %s1014_s19 = sphi %s1072_s19, %s16_s19   ;;  %s1010_s18 = sphi %s1070_s18, %s1349_s18   ;;  %s1006_s17 = sphi %s1068_s17, %s1348_s17   ;;  %s1002_s16 = sphi %s1066_s16, %s1347_s16   ;;  %s998_s15 = sphi %s1064_s15, %s1346_s15   ;;  %s994_s14 = sphi %s1062_s14, %s1345_s14   ;;  %s990_s13 = sphi %s1060_s13, %s1344_s13   ;;  %s986_s12 = sphi %s1058_s12, %s1343_s12  }
   0x6   : > { %s25_s22 = sadd.s32 1, %s1006_s17  ;;  %s28_s23 = sadd.s32 1, %s1010_s18 }
   0x7   : > { %p26_p0 = scmp.ge.s32.totalorder %s25_s22, 2  ;;  %p150_p1 = scmp.ne.s32.totalorder %s994_s14, %s990_s13 }
   0x8   : > { %p151_p2 = scmp.eq.s32.totalorder %s773_s20, 3  ;;  %p156_p5 = scmp.ne.s32.totalorder %s990_s13, %s986_s12 }
   0x9   : > { %s1351_s22 = smov (%p26_p0, %s25_s22), 0  ;;  %s1353_s23 = smov (!%p26_p0, %s28_s23), %s1010_s18 }
   0xa   : > { %s136_s24 = ssub.s32 %s1006_s17, %s1351_s22  ;;  %p1109_p3 = por %p151_p2, %p150_p1 }
   0xb   : > { %p30_p4 = scmp.ge.s32.totalorder %s1353_s23, 2  ;;  %p157_p6 = scmp.eq.s32.totalorder %s774_s21, 3 }
   0xc   : > { %p783_p7 = scmp.ge.s32.totalorder %s1014_s19, 1  ;;  %p226_p9 = scmp.lt.s32.totalorder %s1014_s19, 5 }
   0xd   : > { %s1355_s23 = smov (%p30_p4, %s1353_s23), 0  ;;  %p1118_p8 = por %p157_p6, %p156_p5 }
   0xe   : > { %s135_s27 = ssub.s32 %s1010_s18, %s1355_s23  ;;  %s140_s28 = sadd.s32 1, %s994_s14 }
   0xf   : > { %s137_s29 = sor.u32 %s136_s24, %s135_s27  ;;  %p227_p10 = pnand %p783_p7, %p226_p9 }
  0x10   : > { %p138_p11 = scmp.eq.s32.totalorder %s137_s29, 0  ;;  %p274_p12 = scmp.lt.s32.totalorder (!%p227_p10), %s1002_s16, 1 }
  0x11   : > { %230 = sbr.rel (%p227_p10) target bundleno = 325 (0x145), region = 32  ;;  %p276_p13 = scmp.lt.s32.totalorder (!%p227_p10), %s998_s15, 1 }
  0x12   : > { %s1127_s30 = scalar_select %p138_p11, %s994_s14, %s140_s28  }
  0x13   : > { %s282_s9 = sadd.s32 (!%p227_p10), 1, %s998_s15  ;;  %s1018_s4 = smov (!%p227_p10), 127  }
  0x14   : > { %p283_p0 = scmp.lt.s32.totalorder (!%p227_p10), %s282_s9, 0  ;;  %s284_s20 = ssub.s32 (!%p227_p10), 0, %s282_s9 }
  0x15   : > { %s787_s28 = smin.u32 (!%p227_p10), %s284_s20, %s282_s9  ;;  %p317_p1 = scmp.ne.s32.totalorder (!%p227_p10), %s998_s15, 1 }
  0x16   : > { %v1132_v0 = vld [vmem:[%s1337_s2] sm:$0xff]  ;;  %v1016_v1 = vmov 1   ;;  %v1017_v2 = vmov 2   ;;  %s1140_s6 = scalar_select %p274_p12, %s1002_s16, 1  ;;  %v360_v4 = vld [vmem:[%s1337_s2 + $0x8] sm:$0xff]  ;;  %v1019_v5 = vmov 0   ;;  %v323_v29 = vlaneseq }
  0x17   : > { %889 = vset.pattern.permute.xlu1 %v1016_v1  ;;  %893 = vset.pattern.permute.xlu0 %v1017_v2  ;;  %s277_s7 = scalar_select %p276_p13, %s998_s15, 1  ;;  %v1021_v6 = vmov 3   ;;  %v1022_v7 = vmov 5   ;;  %v1023_v11 = vmov 4   ;;  %v361_v12 = vld [vmem:[%s1337_s2 + $0x10] sm:$0xff]  ;;  %v1024_v13 = vmov 6  }
  0x18   : > { %374 = vperm.xlu1 %889, %v1132_v0   ;;  %s785_s8 = sshll.u32 %s1140_s6, 1  ;;  %s286_s29 = sand.u32 1, %s787_s28   ;;  %v1025_v14 = vmov 7   ;;  %v1178_v15 = vld [vmem:[%s1337_s2 + $0x18] sm:$0xff]  ;;  %v1026_v16 = vmov 8   ;;  %v1027_v17 = vmov 13  }
  0x19   : > { %s279_s10 = sadd.s32 %s785_s8, %s277_s7  ;;  %s1020_s20 = smov 112   ;;  %v1028_v18 = vmov 14   ;;  %v1029_v19 = vmov 15   ;;  %v1030_v20 = vmov 9   ;;  %v1031_v21 = vmov 10  }
  0x1a   : > { %s786_s11 = sshll.u32 %s279_s10, 2  ;;  %s287_s10 = ssub.s32 0, %s286_s29  ;;  %v1032_v22 = vmov 12   ;;  %v1033_v23 = vmov 11   ;;  %v369_v32 = vshrl.u32 %v323_v29, 7  ;;  %v324_v33 = vand.u32 127, %v323_v29 }
  0x1b   : > { %s281_s27 = scalar_lea.vmem %s1335_s0, %s786_s11  ;;  %s1357_s10 = smov (!%p283_p0, %s287_s10), %s286_s29  ;;  %vm352_vm0 = vcmask 916480  }
  0x1c   : > { %890 = vset.pattern.permute.xlu1 %v1017_v2  ;;  %v1152_v3 = vld [vmem:[%s281_s27] sm:$0xf]  ;;  %p789_p2 = scmp.lt.s32.totalorder %s1357_s10, 0  ;;  %s293_s11 = sadd.s32 2, %s1357_s10  ;;  %v1200_v36 = vsub.s32 1, %v369_v32  ;;  %v329_v37 = vand.u32 15, %v324_v33 }
  0x1d   : > { %384 = vperm.xlu1 %890, %v1132_v0   ;;  %339 = vrot.lane.b32.xlu0 %v1152_v3, %s1018_s4  ;;  %s318_s21 = scalar_select %p317_p1, 1, 0  ;;  %v1202_v38 = vsub.s32 0, %v369_v32  ;;  %v1204_v39 = vsub.s32 2, %v369_v32  ;;  %v1222_v48 = vsub.s32 3, %v369_v32 }
  0x1e   : > { %s1359_s11 = smov (!%p789_p2, %s293_s11), %s1357_s10  ;;  %v1208_v41 = vrot.slane %v1152_v3, %v1200_v36  ;;  %vm1210_vm1 = vcmp.eq.s32.totalorder %v329_v37, 15  ;;  %s1034_s6 = smov [#allocation2]  }
  0x1f   : > { %p297_p4 = scmp.lt.s32.totalorder %s1359_s11, 1  ;;  %s319_s24 = scvt.s32.f32 %s318_s21  ;;  %v371_v43 = vrot.slane %v1152_v3, %v1202_v38  ;;  %v1227_v51 = vrot.slane %v1152_v3, %v1204_v39  ;;  %v1235_v59 = vrot.slane %v1152_v3, %v1222_v48 }
  0x20   : > { %s793_s21 = sshll.u32 %s1002_s16, 3 }
  0x21   : > { %891 = vset.pattern.permute.xlu1 %v1019_v5  ;;  %345 = vrot.lane.b32.xlu0 %v1152_v3, %s1020_s20  ;;  %s1361_s11 = smov (!%p297_p4, %s1359_s11), 1  ;;  %v321_v8 = vstv %s319_s24  ;;  %s671_s24 = sadd.s32 %s998_s15, %s793_s21 }
  0x22   : > { %405 = vperm.xlu1 %891, %v360_v4   ;;  %s300_s9 = sadd.s32 %s785_s8, %s1361_s11  ;;  %s926_s8 = sshll.u32 %s1034_s6, 4  ;;  %s927_s8 = int_to_ptr.vmem [resolvable:$false] %s926_s8 }
  0x23   : > { %s791_s27 = sshll.u32 %s300_s9, 2  ;;  %s928_s7 = scalar_lea.vmem %s927_s8, 1024 }
  0x24   : > { %s302_s5 = scalar_lea.vmem %s1336_s1, %s791_s27  ;;  %s794_s27 = sshll.u32 %s671_s24, 7 }
  0x25   : > { %416 = vperm.xlu0 %893, %v360_v4   ;;  %v320_v9 = vld [vmem:[%s302_s5] sm:$0xf]  ;;  %s1279_s29 = scalar_lea.hbm %s1338_s3, %s794_s27 }
  0x26   : > { %892 = vset.pattern.permute.xlu1 %v1016_v1  ;;  %v322_v10 = vmul.f32 %v321_v8, %v320_v9 }
  0x27   : > { %410 = vperm.xlu1 %892, %v360_v4  }
  0x29   : > { %896 = vset.pattern.permute.xlu0 %v1022_v7 }
  0x2a   : > { %437 = vperm.xlu0 %896, %v360_v4  }
  0x2b   : > { %894 = vset.pattern.permute.xlu1 %v1021_v6 }
  0x2c   : > { %422 = vperm.xlu1 %894, %v360_v4  }
  0x2e   : > { %897 = vset.pattern.permute.xlu0 %v1019_v5 }
  0x2f   : > { %365 = vperm.xlu0 %897, %v1132_v0  }
  0x30   : > { %349 = vrot.lane.b32.xlu1 %v322_v10, %s1020_s20 }
  0x31   : > { %895 = vset.pattern.permute.xlu1 %v1023_v11 }
  0x33   : > { %469 = vperm.xlu0 %897, %v361_v12  }
  0x34   : > { %428 = vperm.xlu1 %895, %v360_v4  }
  0x37   : > { %900 = vset.pattern.permute.xlu0 %v1021_v6 }
  0x38   : > { %898 = vset.pattern.permute.xlu1 %v1024_v13  ;;  %394 = vperm.xlu0 %900, %v1132_v0  }
  0x39   : > { %447 = vperm.xlu1 %898, %v360_v4  }
  0x3c   : > { %486 = vperm.xlu0 %900, %v361_v12  }
  0x3d   : > { %899 = vset.pattern.permute.xlu1 %v1025_v14 }
  0x3e   : > { %457 = vperm.xlu1 %899, %v360_v4  }
  0x40   : > { %905 = vset.pattern.permute.xlu0 %v1023_v11 }
  0x41   : > { %556 = vperm.xlu0 %905, %v1178_v15  }
  0x42   : > { %901 = vset.pattern.permute.xlu1 %v1016_v1 }
  0x43   : > { %474 = vperm.xlu1 %901, %v361_v12  }
  0x45   : > { %908 = vset.pattern.permute.xlu0 %v1024_v13 }
  0x46   : > { %567 = vperm.xlu0 %908, %v1178_v15  }
  0x47   : > { %902 = vset.pattern.permute.xlu1 %v1017_v2 }
  0x48   : > { %480 = vperm.xlu1 %902, %v361_v12  }
  0x4a   : > { %911 = vset.pattern.permute.xlu0 %v1026_v16 }
  0x4b   : > { %492 = vperm.xlu0 %911, %v361_v12  }
  0x4c   : > { %903 = vset.pattern.permute.xlu1 %v1019_v5 }
  0x4d   : > { %533 = vperm.xlu1 %903, %v1178_v15  }
  0x4f   : > { %913 = vset.pattern.permute.xlu0 %v1025_v14 }
  0x50   : > { %573 = vperm.xlu0 %913, %v1178_v15  }
  0x51   : > { %904 = vset.pattern.permute.xlu1 %v1016_v1 }
  0x52   : > { %538 = vperm.xlu1 %904, %v1178_v15  }
  0x54   : > { %916 = vset.pattern.permute.xlu0 %v1027_v17 }
  0x55   : > { %613 = vperm.xlu0 %916, %v1178_v15  }
  0x56   : > { %906 = vset.pattern.permute.xlu1 %v1022_v7 }
  0x57   : > { %561 = vperm.xlu1 %906, %v1178_v15  }
  0x59   : > { %919 = vset.pattern.permute.xlu0 %v1028_v18 }
  0x5a   : > { %623 = vperm.xlu0 %919, %v1178_v15  }
  0x5b   : > { %907 = vset.pattern.permute.xlu1 %v1017_v2 }
  0x5c   : > { %544 = vperm.xlu1 %907, %v1178_v15  }
  0x5e   : > { %921 = vset.pattern.permute.xlu0 %v1029_v19 }
  0x60   : > { %909 = vset.pattern.permute.xlu1 %v1026_v16 }
  0x61   : > { %580 = vperm.xlu1 %909, %v1178_v15  }
  0x65   : > { %910 = vset.pattern.permute.xlu1 %v1030_v20 }
  0x66   : > { %585 = vperm.xlu1 %910, %v1178_v15  }
  0x6a   : > { %501 = vperm.xlu1 %910, %v361_v12  }
  0x6e   : > { %912 = vset.pattern.permute.xlu1 %v1021_v6 }
  0x6f   : > { %550 = vperm.xlu1 %912, %v1178_v15  }
  0x73   : > { %914 = vset.pattern.permute.xlu1 %v1031_v21 }
  0x74   : > { %591 = vperm.xlu1 %914, %v1178_v15  }
  0x78   : > { %915 = vset.pattern.permute.xlu1 %v1032_v22 }
  0x79   : > { %604 = vperm.xlu1 %915, %v1178_v15  }
  0x7d   : > { %917 = vset.pattern.permute.xlu1 %v1031_v21 }
  0x7e   : > { %511 = vperm.xlu1 %917, %v361_v12  }
  0x82   : > { %918 = vset.pattern.permute.xlu1 %v1033_v23 }
  0x83   : > { %597 = vperm.xlu1 %918, %v1178_v15  }
  0x87   : > { %521 = vperm.xlu1 %918, %v361_v12  }
  0x8b   : > { %920 = vset.pattern.permute.xlu1 %v1029_v19 }
  0x8f   : > { %v340_v25 = vpop.permute.xlu0 %339 }
  0x90   : > { %v344_v47 = vsel %vm1210_vm1, 0.0, %v340_v25 }
  0x91   : > { %v443_v56 = vrot.slane %v344_v47, %v1200_v36  ;;  %v434_v58 = vrot.slane %v344_v47, %v1202_v38  ;;  %v453_v60 = vrot.slane %v344_v47, %v1204_v39  ;;  %v463_v3 = vrot.slane %v344_v47, %v1222_v48 }
  0x93   : > { %v375_v24 = vpop.permute.xlu1 %374  ;;  %v346_v27 = vpop.permute.xlu0 %345 }
  0x94   : > { %v381_v50 = vmul.f32 %v1208_v41, %v375_v24 }
  0x98   : > { %v385_v26 = vpop.permute.xlu1 %384 }
  0x99   : > { %v391_v61 = vmul.f32 %v1227_v51, %v385_v26 }
  0x9d   : > { %v406_v28 = vpop.permute.xlu1 %405 }
  0x9e   : > { %v408_v55 = vmul.f32 %v406_v28, %v371_v43 }
  0xa0   : > { %v417_v31 = vpop.permute.xlu0 %416 }
  0xa1   : > { %v419_v63 = vmul.f32 %v417_v31, %v1227_v51 }
  0xa2   : > { %v411_v30 = vpop.permute.xlu1 %410 }
  0xa3   : > { %v413_v52 = vmul.f32 %v411_v30, %v1208_v41 }
  0xa5   : > { %v438_v35 = vpop.permute.xlu0 %437  ;;  %v414_v62 = vadd.f32 %v413_v52, %v408_v55 }
  0xa6   : > { %v444_v4 = vmul.f32 %v443_v56, %v438_v35 }
  0xa7   : > { %v423_v34 = vpop.permute.xlu1 %422  ;;  %v420_v8 = vadd.f32 %v419_v63, %v414_v62 }
  0xa8   : > { %v425_v9 = vmul.f32 %v423_v34, %v1235_v59 }
  0xaa   : > { %v366_v45 = vpop.permute.xlu0 %365  ;;  %v426_v16 = vadd.f32 %v425_v9, %v420_v8 }
  0xab   : > { %v350_v40 = vpop.permute.xlu1 %349  ;;  %v372_v46 = vmul.f32 %v371_v43, %v366_v45 }
  0xac   : > { %v1216_v44 = vsel %vm352_vm0, %v346_v27, %v350_v40 }
  0xad   : > { %355 = vrot.lane.b32.xlu1 %v1216_v44, %s1018_s4  ;;  %v382_v57 = vadd.f32 %v381_v50, %v372_v46  ;;  %s271_s4 = sand.u32 1, %s990_s13  }
  0xae   : > { %v470_v53 = vpop.permute.xlu0 %469  ;;  %s784_s11 = sshll.u32 %s271_s4, 5  ;;  %s1284_s15 = scalar_lea.sflag [#allocation3], %s271_s4 }
  0xaf   : > { %v429_v49 = vpop.permute.xlu1 %428  ;;  %v472_v54 = vmul.f32 %v470_v53, %v371_v43  ;;  %v392_v6 = vadd.f32 %v391_v61, %v382_v57  ;;  %s1246_s20 = scalar_lea.vmem [#allocation2], %s784_s11 }
  0xb0   : > { %v435_v0 = vmul.f32 %v434_v58, %v429_v49  ;;  %s674_s9 = sshll.u32 %s1246_s20, 4  ;;  %s1274_s9 = int_to_ptr.vmem [resolvable:$true] %s674_s9 }
  0xb1   : > { %633 = vperm.xlu1 %920, %v1178_v15   ;;  %s922_s5 = scalar_lea.vmem %s1274_s9, 512  ;;  %p929_p9 = scmp.lt.s32.totalorder %s1274_s9, %s927_s8 }
  0xb2   : > { %v445_v10 = vadd.f32 %v444_v4, %v435_v0  ;;  %p923_p5 = scmp.ne.s32.totalorder %s1274_s9, %s922_s5  ;;  %p930_p10 = scmp.lt.s32.totalorder %s928_s7, %s922_s5 }
  0xb3   : > { %v395_v2 = vpop.permute.xlu0 %394 }
  0xb4   : > { %v448_v1 = vpop.permute.xlu1 %447  ;;  %v401_v7 = vmul.f32 %v1235_v59, %v395_v2  ;;  %p924_p6 = pnand %p923_p5, %p1109_p3  ;;  %p931_p11 = por %p930_p10, %p929_p9 }
  0xb5   : > { %v454_v5 = vmul.f32 %v453_v60, %v448_v1 }
  0xb6   : > { %v402_v11 = vadd.f32 %v401_v7, %v392_v6  ;;  %p925_p7 = pneg %p924_p6 }
  0xb7   : > { %v455_v13 = vadd.f32 %v454_v5, %v445_v10  ;;  %v487_v19 = vpop.permute.xlu0 %486 }
  0xb8   : > { %vm643_vm2 = vcmp.ge.f32.partialorder %v402_v11, 0.0  ;;  %v647_v14 = vmul.f32 0.01, %v402_v11  ;;  %p932_p12 = pnand %p931_p11, %p925_p7 }
  0xb9   : > { %v458_v12 = vpop.permute.xlu1 %457 }
  0xba   : > { %v464_v15 = vmul.f32 %v463_v3, %v458_v12  ;;  %v651_v17 = vsel %vm643_vm2, %v402_v11, %v647_v14  ;;  %v527_v11 = vrot.slane %v1216_v44, %v1222_v48 }
  0xbb   : > { %655 = vst [vmem:[%s1246_s20] sm:$0xff] %v651_v17 }
  0xbc   : > { %v465_v18 = vadd.f32 %v464_v15, %v455_v13  ;;  %v557_v26 = vpop.permute.xlu0 %556 }
  0xbd   : > { %v559_v45 = vmul.f32 %v557_v26, %v434_v58 }
  0xbe   : > { %v466_v20 = vadd.f32 %v465_v18, %v426_v16  ;;  %v475_v21 = vpop.permute.xlu1 %474  ;;  %v489_v16 = vmul.f32 %v487_v19, %v1235_v59 }
  0xbf   : > { %v477_v22 = vmul.f32 %v475_v21, %v1208_v41 }
  0xc0   : > { %vm644_vm3 = vcmp.ge.f32.partialorder %v466_v20, 0.0  ;;  %v648_v23 = vmul.f32 0.01, %v466_v20 }
  0xc1   : > { %v478_v24 = vadd.f32 %v477_v22, %v472_v54  ;;  %v568_v30 = vpop.permute.xlu0 %567 }
  0xc2   : > { %v652_v25 = vsel %vm644_vm3, %v466_v20, %v648_v23  ;;  %v570_v49 = vmul.f32 %v568_v30, %v453_v60 }
  0xc3   : > { %656 = vst [vmem:[%s1246_s20 + $0x8] sm:$0xff] %v652_v25  ;;  %v481_v27 = vpop.permute.xlu1 %480 }
  0xc4   : > { %v483_v28 = vmul.f32 %v481_v27, %v1227_v51 }
  0xc6   : > { %v484_v29 = vadd.f32 %v483_v28, %v478_v24  ;;  %v493_v34 = vpop.permute.xlu0 %492 }
  0xc8   : > { %v534_v31 = vpop.permute.xlu1 %533  ;;  %v490_v24 = vadd.f32 %v489_v16, %v484_v29 }
  0xc9   : > { %v536_v32 = vmul.f32 %v534_v31, %v371_v43  ;;  %v498_v43 = vrot.slane %v1216_v44, %v1202_v38 }
  0xcb   : > { %v574_v47 = vpop.permute.xlu0 %573  ;;  %v499_v13 = vmul.f32 %v498_v43, %v493_v34 }
  0xcc   : > { %v576_v52 = vmul.f32 %v574_v47, %v463_v3 }
  0xcd   : > { %v539_v33 = vpop.permute.xlu1 %538 }
  0xce   : > { %v541_v35 = vmul.f32 %v539_v33, %v1208_v41  ;;  %v507_v41 = vrot.slane %v1216_v44, %v1200_v36 }
  0xd0   : > { %v542_v37 = vadd.f32 %v541_v35, %v536_v32  ;;  %v614_v31 = vpop.permute.xlu0 %613 }
  0xd2   : > { %v562_v40 = vpop.permute.xlu1 %561 }
  0xd3   : > { %v564_v46 = vmul.f32 %v562_v40, %v443_v56 }
  0xd5   : > { %v565_v50 = vadd.f32 %v564_v46, %v559_v45  ;;  %v624_v34 = vpop.permute.xlu0 %623 }
  0xd7   : > { %v571_v53 = vadd.f32 %v570_v49, %v565_v50  ;;  %v545_v54 = vpop.permute.xlu1 %544 }
  0xd8   : > { %v547_v55 = vmul.f32 %v545_v54, %v1227_v51  ;;  %v517_v51 = vrot.slane %v1216_v44, %v1204_v39 }
  0xd9   : > { %v577_v57 = vadd.f32 %v576_v52, %v571_v53 }
  0xda   : > { %v548_v61 = vadd.f32 %v547_v55, %v542_v37 }
  0xdc   : > { %v581_v62 = vpop.permute.xlu1 %580 }
  0xdd   : > { %v583_v63 = vmul.f32 %v581_v62, %v498_v43 }
  0xe1   : > { %v586_v58 = vpop.permute.xlu1 %585 }
  0xe2   : > { %v588_v56 = vmul.f32 %v586_v58, %v507_v41 }
  0xe4   : > { %v589_v0 = vadd.f32 %v588_v56, %v583_v63 }
  0xe5   : > { %v502_v60 = vpop.permute.xlu1 %501 }
  0xe6   : > { %v508_v10 = vmul.f32 %v507_v41, %v502_v60 }
  0xe8   : > { %v509_v17 = vadd.f32 %v508_v10, %v499_v13 }
  0xea   : > { %v551_v1 = vpop.permute.xlu1 %550 }
  0xeb   : > { %v553_v2 = vmul.f32 %v551_v1, %v1235_v59 }
  0xed   : > { %v554_v4 = vadd.f32 %v553_v2, %v548_v61 }
  0xef   : > { %v578_v5 = vadd.f32 %v577_v57, %v554_v4  ;;  %v592_v6 = vpop.permute.xlu1 %591 }
  0xf0   : > { %v594_v7 = vmul.f32 %v592_v6, %v517_v51 }
  0xf2   : > { %v595_v3 = vadd.f32 %v594_v7, %v589_v0 }
  0xf4   : > { %v605_v8 = vpop.permute.xlu1 %604 }
  0xf9   : > { %v512_v9 = vpop.permute.xlu1 %511 }
  0xfa   : > { %v518_v14 = vmul.f32 %v517_v51, %v512_v9 }
  0xfc   : > { %v519_v21 = vadd.f32 %v518_v14, %v509_v17 }
  0xfe   : > { %v598_v12 = vpop.permute.xlu1 %597 }
  0xff   : > { %v600_v15 = vmul.f32 %v598_v12, %v527_v11 }
 0x101   : > { %v601_v18 = vadd.f32 %v600_v15, %v595_v3 }
 0x102   : > { %v522_v20 = vpop.permute.xlu1 %521 }
 0x103   : > { %v602_v22 = vadd.f32 %v601_v18, %v578_v5  ;;  %v528_v23 = vmul.f32 %v527_v11, %v522_v20 }
 0x105   : > { %v529_v25 = vadd.f32 %v528_v23, %v519_v21 }
 0x107   : > { %v530_v26 = vadd.f32 %v529_v25, %v490_v24 }
 0x109   : > { %vm645_vm4 = vcmp.ge.f32.partialorder %v530_v26, 0.0  ;;  %v649_v27 = vmul.f32 0.01, %v530_v26 }
 0x10b   : > { %v653_v44 = vsel %vm645_vm4, %v530_v26, %v649_v27 }
 0x10c   : > { %657 = vst [vmem:[%s1246_s20 + $0x10] sm:$0xff] %v653_v44 }
 0x11f   : > { %v356_v28 = vpop.permute.xlu1 %355 }
 0x120   : > { %v358_v30 = vsel %vm1210_vm1, 0.0, %v356_v28 }
 0x121   : > { %v610_v59 = vrot.slane %v358_v30, %v1202_v38  ;;  %v619_v19 = vrot.slane %v358_v30, %v1200_v36  ;;  %v629_v33 = vrot.slane %v358_v30, %v1204_v39  ;;  %v639_v42 = vrot.slane %v358_v30, %v1222_v48 }
 0x123   : > { %v611_v32 = vmul.f32 %v610_v59, %v605_v8  ;;  %v620_v29 = vmul.f32 %v619_v19, %v614_v31  ;;  %v630_v37 = vmul.f32 %v629_v33, %v624_v34 }
 0x125   : > { %v621_v35 = vadd.f32 %v620_v29, %v611_v32 }
 0x127   : > { %v631_v45 = vadd.f32 %v630_v37, %v621_v35 }
 0x12c   : > { %v634_v40 = vpop.permute.xlu1 %633 }
 0x12d   : > { %v640_v46 = vmul.f32 %v639_v42, %v634_v40 }
 0x12f   : > { %v641_v36 = vadd.f32 %v640_v46, %v631_v45 }
 0x131   : > { %v642_v38 = vadd.f32 %v641_v36, %v602_v22 }
 0x133   : > { %vm646_vm5 = vcmp.ge.f32.partialorder %v642_v38, 0.0  ;;  %v650_v39 = vmul.f32 0.01, %v642_v38 }
 0x135   : > { %v654_v48 = vsel %vm646_vm5, %v642_v38, %v650_v39 }
 0x136   : > { %658 = vst [vmem:[%s1246_s20 + $0x18] sm:$0xff] %v654_v48 }
 0x137   : > { %935 = shalt.err (!%p932_p12)
}
 0x138   : > { %s936_s10 = scalar_lea.hbm %s1279_s29, 512  ;;  %s940_s20 = scalar_lea.hbm %s1338_s3, 2048 }
 0x139   : > { %p937_p13 = scmp.ne.s32.totalorder %s1279_s29, %s936_s10  ;;  %p941_p2 = scmp.lt.s32.totalorder %s1279_s29, %s1338_s3 }
 0x13a   : > { %p942_p4 = scmp.lt.s32.totalorder %s940_s20, %s936_s10 }
 0x13b   : > { %p938_p0 = pnand %p937_p13, %p1109_p3 }
 0x13c   : > { %p943_p5 = por %p942_p4, %p941_p2 }
 0x13d   : > { %p939_p1 = pneg %p938_p0 }
 0x13f   : > { %p944_p6 = pnand %p943_p5, %p939_p1 }
 0x141   : > { %947 = shalt.err (!%p944_p6)
}
 0x142   : > { %s1035_s27 = smov 128   ;;  %s1036_s16 = smov 256  }
 0x143   : > { %s1037_s28 = smov 8  }
 0x144   : > { %797 = dma.vmem_to_hbm [thread:$0]  (%p1109_p3), %s1274_s9, 512, %s1279_s29, %s1284_s15, %s1035_s27, %s1036_s16, %s1037_s28  }
 0x145 PF: > { %p803_p7 = scmp.ge.s32.totalorder %s1014_s19, 2  ;;  %s689_s5 = sand.u32 1, %s986_s12  }
 0x146   : > { %s690_s6 = scalar_lea.sflag [#allocation3], %s689_s5 }
 0x147   : > { %p800_p9 = pnand %p803_p7, %p1118_p8 }
 0x149   : > { %p801_p10 = pneg %p800_p9 }
 0x14b   : > { %981 = dma.done.wait (%p801_p10), %s690_s6, 512  }
 0x14c   : > { %983 = vsyncadd (%p801_p10), %s690_s6, 4294966784  ;;  %s16_s19 = sadd.s32 1, %s1014_s19   ;;  %s1343_s12 = smov %s990_s13 }
 0x14d   : > { %p13_p11 = scmp.ge.s32.totalorder %s16_s19, 6   ;;  %s1344_s13 = smov %s994_s14 }
 0x14e   : > { %s1345_s14 = smov %s1127_s30  ;;  %s1346_s15 = smov %s1006_s17 }
 0x14f   : > { %s1347_s16 = smov %s1010_s18  ;;  %s1348_s17 = smov %s1351_s22 }
 0x150   : > { %s1349_s18 = smov %s1355_s23  ;;  %15 = sbr.rel (!%p13_p11) target bundleno = 5 (0x5), region = 70 }
 0x155   :  { %695 = vsyncpa [#allocation3], 1 }
 0x156   :  { %697 = vsyncpa [#allocation3 + $0x1], 1 }

</bundles_post_ra>
